<compile_context>
chip_gen: v5e
topology: v5e:2x2
jax: 0.10.0
libtpu: 0.0.40
codegen_flags: <defaults>
</compile_context>

<pallas_src>
import functools

import jax
import jax.numpy as jnp
from jax.experimental import pallas as pl
from jax.experimental.pallas import tpu as pltpu


# --------------------------------------------------------------------------- #
# Kernel
# --------------------------------------------------------------------------- #
def _avg_reducer_kernel(h_ref, w_hbm, b_hbm, out_ref,
                        acc_ref, w_vmem, b_vmem, dma_sem,
                        *, inv_t, groups, embed_dim):
    """Grid = (B/TB, L/TT); axis 1 (the packed sequence axis) is the reduction."""
    t = pl.program_id(1)
    last = pl.num_programs(1) - 1

    @pl.when(t == 0)
    def _():
        # Zero the f32 accumulator at the start of each reduction pass.
        acc_ref[...] = jnp.zeros_like(acc_ref)
        # Single-buffered fused weight/bias: start the HBM->VMEM copy now; it
        # hides behind the whole reduction pass and is awaited only at t==last.
        pltpu.make_async_copy(w_hbm, w_vmem, dma_sem.at[0]).start()
        pltpu.make_async_copy(b_hbm, b_vmem, dma_sem.at[1]).start()

    # Partial sum over this sequence tile, accumulated in f32.
    # NOTE(v7x): if the in-loop f32 upcast+add ever binds the VALU slot (per-TC
    # HBM bandwidth is ~2.5x higher there), route this reduce through the MXU
    # instead (ones(1, TT) @ tile with preferred_element_type=f32).
    acc_ref[...] += jnp.sum(h_ref[...].astype(jnp.float32), axis=1)

    @pl.when(t == last)
    def _():
        pltpu.make_async_copy(w_hbm, w_vmem, dma_sem.at[0]).wait()
        pltpu.make_async_copy(b_hbm, b_vmem, dma_sem.at[1]).wait()

        acc = acc_ref[...]                                    # (TB, lane) f32
        if groups > 1:
            # Lane-packed path (E < 128): collapse the 128/E lane groups.
            tot = acc[:, :embed_dim]
            for g in range(1, groups):
                tot = tot + acc[:, g * embed_dim:(g + 1) * embed_dim]
            acc = tot                                         # (TB, E) f32

        r = acc * inv_t                                       # mean over T
        proj = jnp.dot(r.astype(w_vmem.dtype), w_vmem[...],
                       preferred_element_type=jnp.float32)    # (TB, 2E) f32
        proj = proj + b_vmem[...].astype(jnp.float32)
        out_ref[...] = proj.astype(out_ref.dtype)


# --------------------------------------------------------------------------- #
# Tile selection / VMEM budgeting
# --------------------------------------------------------------------------- #
def _vmem_capacity_bytes():
    try:
        return int(pltpu.get_tpu_info().vmem_capacity_bytes)
    except Exception:
        return 128 << 20          # conservative v5e/v6e default


def _pick_batch_tile(B):
    """Largest legal batch tile (multiple of 8, or the full batch), capped so
    the batch grid axis has >= 2 steps when B >= 16: the batch axis is the
    'parallel' axis, so this keeps both TensorCores busy on megacore parts."""
    if B < 16:
        return B
    cap = min(256, B // 2)
    for c in range(cap - cap % 8, 7, -8):
        if B % c == 0:
            return c
    return B


def _batch_tile_candidates(B):
    tb0 = _pick_batch_tile(B)
    cands = {d for d in range(8, tb0 + 1, 8) if B % d == 0}
    cands.add(tb0)
    return sorted(cands, reverse=True)


def _seq_tile_candidates(L, itemsize):
    """Divisors of L usable as the (sublane) sequence tile, largest first.
    Dtype-aware floor (f32: 8, bf16: 16, int8/fp8: 32) keeps packed sublanes
    full; falls back to 8-aligned, then the full extent for tiny L."""
    min_tt = max(8, 32 // itemsize)
    divs = [d for d in range(1, L + 1) if L % d == 0]
    pref = [d for d in divs if d % min_tt == 0]
    if not pref:
        pref = [d for d in divs if d % 8 == 0]
    if not pref:
        pref = [L]
    return sorted(pref, reverse=True)


def _select_tiles(B, L, lane, itemsize, budget_bytes):
    """Co-select (TB, TT): the largest streamed (TB, TT, lane) tile within the
    per-buffer DMA budget.  TB shrinks before TT ever falls back to the full
    sequence (a full-T block can be hundreds of MiB and breaks pipelining)."""
    tb_cands = _batch_tile_candidates(B)
    tt_cands = _seq_tile_candidates(L, itemsize)
    for tb in tb_cands:
        for tt in tt_cands:                # descending: first fit is the largest
            if tb * tt * lane * itemsize <= budget_bytes:
                return tb, tt
    return tb_cands[-1], tt_cands[-1]      # nothing fits: smallest legal pair


def _vmem_limit_bytes(TB, TT, lane, E, h_item, w_item, out_item, cap_bytes):
    h = 2 * TB * TT * lane * h_item            # double-buffered h tiles
    w = (E * 2 * E + 2 * E) * w_item           # single-buffered fused weight+bias
    o = 2 * TB * 2 * E * out_item              # output block buffers
    acc = TB * lane * 4                        # f32 accumulator scratch
    need = h + w + o + acc + (4 << 20)         # compiler-internal headroom
    return int(min(max(need, 32 << 20), cap_bytes))


# --------------------------------------------------------------------------- #
# Wrappers
# --------------------------------------------------------------------------- #
def fuse_avg_reducer_params(w_mean, b_mean, w_logvar, b_logvar):
    """Fuse the two Conv1D projections into one (E, 2E) weight / (1, 2E) bias.

    Call ONCE at parameter-init time (hoisted out of the per-call path)."""
    w_cat = jnp.concatenate([w_mean, w_logvar], axis=1)
    b_cat = jnp.concatenate([jnp.reshape(b_mean, (1, -1)),
                             jnp.reshape(b_logvar, (1, -1))], axis=1)
    return w_cat, b_cat


def avg_reducer(hidden_states, w_cat, b_cat):
    """hidden_states: (B, T, E); w_cat: (E, 2E); b_cat: (1, 2E) (pre-fused).

    Returns (mean, logvar), each (B, E)."""
    B, T, E = hidden_states.shape
    assert w_cat.shape == (E, 2 * E) and b_cat.shape == (1, 2 * E)
    out_dtype = hidden_states.dtype
    h_item = jnp.dtype(hidden_states.dtype).itemsize
    w_item = jnp.dtype(w_cat.dtype).itemsize
    out_item = jnp.dtype(out_dtype).itemsize

    # Lane-pack small embeddings: (B, T, E) -> (B, T*E/128, 128) is a free,
    # contiguous reshape that makes the streamed reduce and the accumulator
    # lane-dense (E=32 would otherwise run at 25% lane occupancy).
    if E < 128 and 128 % E == 0 and (T * E) % 128 == 0:
        lane = 128
        groups = lane // E
        L = (T * E) // lane
        h_in = hidden_states.reshape(B, L, lane)
    else:
        lane, groups, L = E, 1, T
        h_in = hidden_states

    # Per-generation budgets: bigger streamed tiles on 128-MiB-VMEM parts,
    # tighter scoped-VMEM cap on the 64-MiB v7x.
    vmem_cap = _vmem_capacity_bytes()
    if vmem_cap >= (100 << 20):        # v5e / v6e (128 MiB physical VMEM)
        h_budget, limit_cap = 14 << 20, 100 << 20
    else:                              # v7x (64 MiB per-TC VMEM)
        h_budget, limit_cap = 8 << 20, 48 << 20

    TB, TT = _select_tiles(B, L, lane, h_item, h_budget)
    grid = (B // TB, L // TT)

    kernel = functools.partial(_avg_reducer_kernel,
                               inv_t=float(1.0 / T), groups=groups, embed_dim=E)

    grid_spec = pltpu.PrefetchScalarGridSpec(
        num_scalar_prefetch=0,
        grid=grid,
        in_specs=[
            # hidden_states: streamed, double-buffered (TB, TT, lane) tiles.
            pl.BlockSpec((TB, TT, lane), lambda b, t: (b, t, 0)),
            # fused weight / bias: stay in HBM; copied into single-buffered
            # VMEM scratch inside the kernel (copy hidden behind the reduce).
            pl.BlockSpec(memory_space=pl.ANY),
            pl.BlockSpec(memory_space=pl.ANY),
        ],
        out_specs=pl.BlockSpec((TB, 2 * E), lambda b, t: (b, 0)),
        scratch_shapes=[
            pltpu.VMEM((TB, lane), jnp.float32),      # f32 accumulator
            pltpu.VMEM((E, 2 * E), w_cat.dtype),      # fused weight (1 buffer)
            pltpu.VMEM((1, 2 * E), b_cat.dtype),      # fused bias
            pltpu.SemaphoreType.DMA((2,)),
        ],
    )

    vmem_limit = _vmem_limit_bytes(TB, TT, lane, E, h_item, w_item, out_item,
                                   limit_cap)

    cost = pl.CostEstimate(
        flops=int(B * T * E + 2 * B * E * (2 * E)),
        transcendentals=0,
        bytes_accessed=int(B * T * E * h_item
                           + (E * 2 * E + 2 * E) * w_item
                           + B * 2 * E * out_item),
    )

    out = pl.pallas_call(
        kernel,
        out_shape=jax.ShapeDtypeStruct((B, 2 * E), out_dtype),
        grid_spec=grid_spec,
        compiler_params=pltpu.CompilerParams(
            dimension_semantics=("parallel", "arbitrary"),
            vmem_limit_bytes=vmem_limit,
        ),
        cost_estimate=cost,
    )(h_in, w_cat, b_cat)

    return out[:, :E], out[:, E:]


# --------------------------------------------------------------------------- #
# Reference + test
# --------------------------------------------------------------------------- #
def _reference(hidden_states, w_mean, b_mean, w_logvar, b_logvar):
    r = jnp.mean(hidden_states.astype(jnp.float32), axis=1)
    mean = r @ w_mean.astype(jnp.float32) + b_mean.astype(jnp.float32)
    logvar = r @ w_logvar.astype(jnp.float32) + b_logvar.astype(jnp.float32)
    return mean, logvar


def _run_case(key, B, T, E, dtype=jnp.float32):
    k_h, k_wm, k_wl, k_bm, k_bl = jax.random.split(key, 5)
    h = jax.random.normal(k_h, (B, T, E), dtype=jnp.float32).astype(dtype)
    # GPT-2 Conv1D-style params (weights ~ N(0, 0.02); small nonzero biases so
    # the bias path is actually exercised).
    w_mean = (0.02 * jax.random.normal(k_wm, (E, E), jnp.float32)).astype(dtype)
    w_logvar = (0.02 * jax.random.normal(k_wl, (E, E), jnp.float32)).astype(dtype)
    b_mean = (0.01 * jax.random.normal(k_bm, (1, E), jnp.float32)).astype(dtype)
    b_logvar = (0.01 * jax.random.normal(k_bl, (1, E), jnp.float32)).astype(dtype)

    # Fused (E, 2E) projection params are built ONCE here (init time).
    w_cat, b_cat = fuse_avg_reducer_params(w_mean, b_mean, w_logvar, b_logvar)

    mean, logvar = avg_reducer(h, w_cat, b_cat)
    jax.block_until_ready((mean, logvar))

    ref_mean, ref_logvar = _reference(h, w_mean, b_mean, w_logvar, b_logvar)
    assert mean.shape == (B, E) and logvar.shape == (B, E)
    assert jnp.allclose(mean.astype(jnp.float32), ref_mean, atol=2e-5, rtol=2e-5)
    assert jnp.allclose(logvar.astype(jnp.float32), ref_logvar,
                        atol=2e-5, rtol=2e-5)


if __name__ == "__main__":
    key = jax.random.PRNGKey(0)
    k1, k2 = jax.random.split(key)
    # Small shapes consistent with the module: (B, T, E) = (2, 8, 32).
    # E=32 < 128 exercises the lane-packed reduction path.
    _run_case(k1, B=2, T=8, E=32)
    # E=128 exercises the standard (unpacked) streaming path.
    _run_case(k2, B=4, T=16, E=128)
    print("KERNEL_OK")
</pallas_src>

<mosaic_0001>
module attributes {stable_mosaic.version = 11 : i64} {
  func.func @_avg_reducer_kernel(%arg0: i32, %arg1: i32, %arg2: memref<2x2x128xf32, #tpu.memory_space<vmem>>, %arg3: memref<32x64xf32, #tpu.memory_space<any>>, %arg4: memref<1x64xf32, #tpu.memory_space<any>>, %arg5: memref<2x64xf32, #tpu.memory_space<vmem>>, %arg6: memref<2x128xf32, #tpu.memory_space<vmem>>, %arg7: memref<32x64xf32, #tpu.memory_space<vmem>>, %arg8: memref<1x64xf32, #tpu.memory_space<vmem>>, %arg9: memref<2x!tpu.dma_semaphore, #tpu.memory_space<semaphore_mem>>) attributes {dimension_semantics = [#tpu.dimension_semantics<parallel>, #tpu.dimension_semantics<arbitrary>], iteration_bounds = array<i64: 1, 1>, scalar_prefetch = 0 : i64, scratch_operands = 4 : i64, tpu.core_type = #tpu.core_type<tc>, window_params = [{transform_indices = @transform_0, window_bounds = array<i64: 2, 2, 128>}, {}, {}, {transform_indices = @transform_3, window_bounds = array<i64: 2, 64>}]} {
    %c0_i32 = arith.constant 0 : i32
    %0 = arith.cmpi eq, %arg1, %c0_i32 : i32
    %1 = arith.extui %0 : i1 to i32
    %c0_i32_0 = arith.constant 0 : i32
    %2 = arith.cmpi ne, %1, %c0_i32_0 : i32
    scf.if %2 {
      %cst_9 = arith.constant 0.000000e+00 : f32
      %11 = vector.broadcast %cst_9 : f32 to vector<2x128xf32>
      %c0_10 = arith.constant 0 : index
      %c0_11 = arith.constant 0 : index
      %12 = vector.load %arg6[%c0_10, %c0_11] : memref<2x128xf32, #tpu.memory_space<vmem>>, vector<2x128xf32>
      tpu.vector_store %arg6[%c0_10, %c0_11], %11 {strides = array<i32>} : memref<2x128xf32, #tpu.memory_space<vmem>>, vector<2x128xf32>,
      %c0_i32_12 = arith.constant 0 : i32
      %13 = tpu.memref_slice %arg9[%c0_i32_12] : memref<2x!tpu.dma_semaphore, #tpu.memory_space<semaphore_mem>> -> memref<1x!tpu.dma_semaphore, #tpu.memory_space<semaphore_mem>>
      %14 = tpu.memref_squeeze %13 : memref<1x!tpu.dma_semaphore, #tpu.memory_space<semaphore_mem>> -> memref<!tpu.dma_semaphore, #tpu.memory_space<semaphore_mem>>
      tpu.enqueue_dma source(%arg3 : memref<32x64xf32, #tpu.memory_space<any>>) target(%arg7 : memref<32x64xf32, #tpu.memory_space<vmem>>) target_semaphore(%14 : memref<!tpu.dma_semaphore, #tpu.memory_space<semaphore_mem>>)
      %c1_i32 = arith.constant 1 : i32
      %15 = tpu.memref_slice %arg9[%c1_i32] : memref<2x!tpu.dma_semaphore, #tpu.memory_space<semaphore_mem>> -> memref<1x!tpu.dma_semaphore, #tpu.memory_space<semaphore_mem>>
      %16 = tpu.memref_squeeze %15 : memref<1x!tpu.dma_semaphore, #tpu.memory_space<semaphore_mem>> -> memref<!tpu.dma_semaphore, #tpu.memory_space<semaphore_mem>>
      tpu.enqueue_dma source(%arg4 : memref<1x64xf32, #tpu.memory_space<any>>) target(%arg8 : memref<1x64xf32, #tpu.memory_space<vmem>>) target_semaphore(%16 : memref<!tpu.dma_semaphore, #tpu.memory_space<semaphore_mem>>)
    } else {
    }
    %c0 = arith.constant 0 : index
    %c0_1 = arith.constant 0 : index
    %3 = vector.load %arg6[%c0, %c0_1] : memref<2x128xf32, #tpu.memory_space<vmem>>, vector<2x128xf32>
    %c0_2 = arith.constant 0 : index
    %c0_3 = arith.constant 0 : index
    %c0_4 = arith.constant 0 : index
    %4 = vector.load %arg2[%c0_2, %c0_3, %c0_4] : memref<2x2x128xf32, #tpu.memory_space<vmem>>, vector<2x2x128xf32>
    %cst = arith.constant dense<0.000000e+00> : vector<2x128xf32>
    %5 = vector.multi_reduction <add>, %4, %cst [1] : vector<2x2x128xf32> to vector<2x128xf32>
    %6 = arith.addf %3, %5 : vector<2x128xf32>
    %c0_5 = arith.constant 0 : index
    %c0_6 = arith.constant 0 : index
    %7 = vector.load %arg6[%c0_5, %c0_6] : memref<2x128xf32, #tpu.memory_space<vmem>>, vector<2x128xf32>
    tpu.vector_store %arg6[%c0_5, %c0_6], %6 {strides = array<i32>} : memref<2x128xf32, #tpu.memory_space<vmem>>, vector<2x128xf32>,
    %c0_i32_7 = arith.constant 0 : i32
    %8 = arith.cmpi eq, %arg1, %c0_i32_7 : i32
    %9 = arith.extui %8 : i1 to i32
    %c0_i32_8 = arith.constant 0 : i32
    %10 = arith.cmpi ne, %9, %c0_i32_8 : i32
    scf.if %10 {
      %c0_i32_9 = arith.constant 0 : i32
      %11 = tpu.memref_slice %arg9[%c0_i32_9] : memref<2x!tpu.dma_semaphore, #tpu.memory_space<semaphore_mem>> -> memref<1x!tpu.dma_semaphore, #tpu.memory_space<semaphore_mem>>
      %12 = tpu.memref_squeeze %11 : memref<1x!tpu.dma_semaphore, #tpu.memory_space<semaphore_mem>> -> memref<!tpu.dma_semaphore, #tpu.memory_space<semaphore_mem>>
      tpu.wait_dma2 semaphore(%12 : memref<!tpu.dma_semaphore, #tpu.memory_space<semaphore_mem>>) src(%arg3 : memref<32x64xf32, #tpu.memory_space<any>>) dst(%arg7 : memref<32x64xf32, #tpu.memory_space<vmem>>)
      %c1_i32 = arith.constant 1 : i32
      %13 = tpu.memref_slice %arg9[%c1_i32] : memref<2x!tpu.dma_semaphore, #tpu.memory_space<semaphore_mem>> -> memref<1x!tpu.dma_semaphore, #tpu.memory_space<semaphore_mem>>
      %14 = tpu.memref_squeeze %13 : memref<1x!tpu.dma_semaphore, #tpu.memory_space<semaphore_mem>> -> memref<!tpu.dma_semaphore, #tpu.memory_space<semaphore_mem>>
      tpu.wait_dma2 semaphore(%14 : memref<!tpu.dma_semaphore, #tpu.memory_space<semaphore_mem>>) src(%arg4 : memref<1x64xf32, #tpu.memory_space<any>>) dst(%arg8 : memref<1x64xf32, #tpu.memory_space<vmem>>)
      %c0_10 = arith.constant 0 : index
      %c0_11 = arith.constant 0 : index
      %15 = vector.load %arg6[%c0_10, %c0_11] : memref<2x128xf32, #tpu.memory_space<vmem>>, vector<2x128xf32>
      %16 = vector.extract_strided_slice %15 {offsets = [0, 0], sizes = [2, 32], strides = [1, 1]} : vector<2x128xf32> to vector<2x32xf32>
      %17 = vector.extract_strided_slice %15 {offsets = [0, 32], sizes = [2, 32], strides = [1, 1]} : vector<2x128xf32> to vector<2x32xf32>
      %18 = arith.addf %16, %17 : vector<2x32xf32>
      %19 = vector.extract_strided_slice %15 {offsets = [0, 64], sizes = [2, 32], strides = [1, 1]} : vector<2x128xf32> to vector<2x32xf32>
      %20 = arith.addf %18, %19 : vector<2x32xf32>
      %21 = vector.extract_strided_slice %15 {offsets = [0, 96], sizes = [2, 32], strides = [1, 1]} : vector<2x128xf32> to vector<2x32xf32>
      %22 = arith.addf %20, %21 : vector<2x32xf32>
      %cst_12 = arith.constant 1.250000e-01 : f32
      %23 = vector.broadcast %cst_12 : f32 to vector<2x32xf32>
      %24 = arith.mulf %22, %23 : vector<2x32xf32>
      %c0_13 = arith.constant 0 : index
      %c0_14 = arith.constant 0 : index
      %25 = vector.load %arg7[%c0_13, %c0_14] : memref<32x64xf32, #tpu.memory_space<vmem>>, vector<32x64xf32>
      %cst_15 = arith.constant dense<0.000000e+00> : vector<2x64xf32>
      %26 = tpu.matmul %24, %25, %cst_15 {dimension_numbers = #tpu.dot_dimension_numbers<[1], [0], [0], [1], [0, 0, 1, 1], [], []>} : vector<2x32xf32>, vector<32x64xf32>, vector<2x64xf32> -> vector<2x64xf32>
      %c0_16 = arith.constant 0 : index
      %c0_17 = arith.constant 0 : index
      %27 = vector.load %arg8[%c0_16, %c0_17] : memref<1x64xf32, #tpu.memory_space<vmem>>, vector<1x64xf32>
      %28 = vector.broadcast %27 : vector<1x64xf32> to vector<2x64xf32>
      %29 = arith.addf %26, %28 : vector<2x64xf32>
      %c0_18 = arith.constant 0 : index
      %c0_19 = arith.constant 0 : index
      %30 = vector.load %arg5[%c0_18, %c0_19] : memref<2x64xf32, #tpu.memory_space<vmem>>, vector<2x64xf32>
      tpu.vector_store %arg5[%c0_18, %c0_19], %29 {strides = array<i32>} : memref<2x64xf32, #tpu.memory_space<vmem>>, vector<2x64xf32>,
    } else {
    }
    return
  }
  func.func @transform_0(%arg0: i32, %arg1: i32) -> (i32, i32, i32) {
    %c0_i32 = arith.constant 0 : i32
    %c0_i32_0 = arith.constant 0 : i32
    return %arg0, %arg1, %c0_i32 : i32, i32, i32
  }
  func.func @transform_3(%arg0: i32, %arg1: i32) -> (i32, i32) {
    %c0_i32 = arith.constant 0 : i32
    %c0_i32_0 = arith.constant 0 : i32
    return %arg0, %c0_i32 : i32, i32
  }
}

</mosaic_0001>

<bundles_post_ra>
// kernel: tpu_custom_call.1
= control target key start
LH: loop header
LB: loop body
LE: loop exit
PB: predicated region body
PF: predicated region fallthrough
CT: control target
= control target key end

     0   :  { %8 = vsyncpa [#allocation7], 0  ;;  %s333_s0 = inlined_call_operand.hbm [shape: f32[2,2,128], index: 0, kind: input, shape index: {}]   ;;  %s334_s1 = inlined_call_operand.hbm [shape: f32[32,64], index: 1, kind: input, shape index: {}]   ;;  %s335_s2 = inlined_call_operand.vmem [shape: f32[1,64], index: 2, kind: input, shape index: {}]   ;;  %s336_s3 = inlined_call_operand.hbm [shape: f32[2,64], index: 3, kind: output, shape index: {}]  }
   0x1   :  { %9 = vsyncpa [#allocation8], 0  ;;  %s14_s14 = sshll.u32 %s333_s0, 4  ;;  %s290_s15 = smov [#allocation6]   ;;  %s15_s14 = int_to_ptr.hbm [resolvable:$true] %s14_s14 }
   0x2   :  { %s16_s16 = sshll.u32 %s290_s15, 4  ;;  %s291_s17 = smov 32   ;;  %s17_s16 = int_to_ptr.vmem [resolvable:$true] %s16_s16 }
   0x3   :  { %s292_s18 = smov 2  }
   0x4   :  { %22 = dma.hbm_to_vmem [thread:$0]  %s15_s14, 64, %s17_s16, [#allocation7], %s291_s17, %s291_s17, %s292_s18  }
   0x5   :  { %282 = dma.done.wait [#allocation7], 64  }
   0x6   :  { %283 = vsyncadd [#allocation7], 4294967232  ;;  %s39_s21 = sshll.u32 %s334_s1, 4  ;;  %v293_v0 = vmov 0.0   ;;  %s294_s22 = smov [#allocation3]   ;;  %s40_s21 = int_to_ptr.hbm [resolvable:$true] %s39_s21 }
   0x7   :  { %31 = vst [vmem:[#allocation2] sm:$0x3] %v293_v0  ;;  %s41_s0 = sshll.u32 %s294_s22, 4  ;;  %v60_v1 = vld [vmem:[%s335_s2] sm:$0x1]  ;;  %s42_s0 = int_to_ptr.vmem [resolvable:$true] %s41_s0 }
   0x8   :  { %44 = dma.hbm_to_vmem [thread:$0]  %s40_s21, 512, %s42_s0, [#allocation5]  ;;  %61 = vst [vmem:[#allocation4] sm:$0x1] %v60_v1 }
   0x9   :  { %79 = vsyncadd [#allocation5 + $0x1], 16  ;;  %v81_v2 = vld [vmem:[#allocation6] sm:$0x3]  ;;  %v82_v3 = vld [vmem:[#allocation6 + $0x2] sm:$0x3] }
   0xa   :  { %vm83_vm0 = vcmask 1041408   ;;  %vm100_vm1 = vcmask 1041409  }
   0xb   :  { %v84_v4 = vsel %vm83_vm0, %v81_v2, 0.0  ;;  %v91_v5 = vsel %vm83_vm0, %v82_v3, 0.0 }
   0xc   :  { %v85_v6 = vrot.slane %v84_v4, 4  ;;  %v92_v7 = vrot.slane %v91_v5, 4 }
   0xe   :  { %v86_v8 = vadd.f32 %v85_v6, %v84_v4  ;;  %v93_v9 = vadd.f32 %v92_v7, %v91_v5  ;;  %v80_v16 = vld [vmem:[#allocation2] sm:$0x3] }
  0x10   :  { %v87_v10 = vrot.slane %v86_v8, 2  ;;  %v94_v11 = vrot.slane %v93_v9, 2 }
  0x12   :  { %v88_v12 = vadd.f32 %v87_v10, %v86_v8  ;;  %v95_v13 = vadd.f32 %v94_v11, %v93_v9 }
  0x14   :  { %v89_v14 = vrot.slane %v88_v12, 1  ;;  %v96_v15 = vrot.slane %v95_v13, 1 }
  0x16   :  { %v90_v17 = vadd.f32 %v89_v14, %v88_v12  ;;  %v97_v18 = vadd.f32 %v96_v15, %v95_v13 }
  0x18   :  { %v101_v19 = vsel %vm100_vm1, %v97_v18, %v90_v17 }
  0x19   :  { %v103_v20 = vadd.f32 %v101_v19, %v80_v16 }
  0x1b   :  { %104 = vst [vmem:[#allocation2] sm:$0x3] %v103_v20 }
  0x1c   :  { %284 = dma.done.wait [#allocation5], 512 }
  0x1d   :  { %285 = vsyncadd [#allocation5], 4294966784 }
  0x1e   :  { %286 = dma.done.wait [#allocation5 + $0x1], 16 }
  0x1f   :  { %287 = vsyncadd [#allocation5 + $0x1], 4294967280  ;;  %s295_s1 = smov 96   ;;  %s296_s2 = smov 64   ;;  %v133_v22 = vld [vmem:[#allocation3 + $0x18] sm:$0xff]  ;;  %v132_v23 = vld [vmem:[#allocation3 + $0x10] sm:$0xff] }
  0x20   :  { %154 = vmatpush.msra.mxu0 %v133_v22  ;;  %v131_v24 = vld [vmem:[#allocation3 + $0x8] sm:$0xff]  ;;  %v130_v25 = vld [vmem:[#allocation3] sm:$0xff]  ;;  %vm138_vm2 = vcmask 261120   ;;  %s297_s25 = smov [#allocation9]   ;;  %s171_s29 = sshll.u32 %s336_s3, 4  ;;  %vm162_vm3 = vcmask 517120   ;;  %s172_s29 = int_to_ptr.hbm [resolvable:$true] %s171_s29 }
  0x21   :  { %v209_v33 = vld [vmem:[#allocation4] ss:$0 sm:$0xff]  ;;  %s169_s26 = sshll.u32 %s297_s25, 4  ;;  %s170_s26 = int_to_ptr.vmem [resolvable:$true] %s169_s26 }
  0x22   :  { %v115_v21 = vld [vmem:[#allocation2] sm:$0x3]  ;;  %155 = vmatpush.msra.mxu0 %v132_v23 }
  0x23   :  { %117 = vrot.lane.b32.xlu0 %v115_v21, %s295_s1  ;;  %125 = vrot.lane.b32.xlu1 %v115_v21, %s291_s17 }
  0x24   :  { %156 = vmatpush.msra.mxu0 %v131_v24 }
  0x26   :  { %157 = vmatpush.msra.mxu0 %v130_v25 }
  0x2b   :  { %121 = vrot.lane.b32.xlu0 %v115_v21, %s296_s2 }
  0x95   :  { %v118_v26 = vpop.permute.xlu0 %117  ;;  %v126_v29 = vpop.permute.xlu1 %125 }
  0x96   :  { %v120_v27 = vadd.f32 %v118_v26, %v115_v21 }
  0x9d   :  { %v122_v28 = vpop.permute.xlu0 %121 }
  0x9e   :  { %v124_v30 = vadd.f32 %v122_v28, %v120_v27 }
  0xa0   :  { %v128_v31 = vadd.f32 %v126_v29, %v124_v30 }
  0xa2   :  { %v129_v32 = vmul.f32 0.125, %v128_v31 }
  0xa4   :  { %198 = vmatmul.msk.f32.vlgmr.msra.gmra.mxu0 %vm138_vm2, %v129_v32 }
 0x121   :  { %v159_v34 = vpop.f32.mrf.mxu0 }
 0x122   :  { %v160_v35 = vadd.f32 %v209_v33, %v159_v34 }
 0x124   :  { %163 = vst.msk [vmem:[#allocation9] sm:$0x3] %vm162_vm3, %v160_v35 }
 0x125   :  { %174 = dma.vmem_to_hbm [thread:$0]  %s170_s26, 32, %s172_s29, [#allocation8]  }
 0x126   :  { %288 = dma.done.wait [#allocation8], 32  }
 0x127   :  { %289 = vsyncadd [#allocation8], 4294967264 }
 0x128   :  { %179 = vsyncpa [#allocation7], 1 }
 0x129   :  { %180 = vsyncpa [#allocation8], 1 }
 0x12a   :  { %181 = vsyncmov [#allocation5] }
 0x12d   :  { %s182_s30 = vpop.sfrf %181 }
 0x12e   :  { %p199_p0 = scmp.ne.s32.totalorder %s182_s30, 0 }
 0x130   :  { %186 = shalt.err (%p199_p0)  }
 0x131   :  { %188 = vsyncmov [#allocation5 + $0x1] }
 0x134   :  { %s189_s4 = vpop.sfrf %188 }
 0x135   :  { %p200_p1 = scmp.ne.s32.totalorder %s189_s4, 0 }
 0x137   :  { %193 = shalt.err (%p200_p1)  }

</bundles_post_ra>
